<compile_context>
chip_gen: v6e
topology: v6e:2x2x1
jax: 0.10.0
libtpu: 0.0.40
codegen_flags: <defaults>
</compile_context>

<pallas_src>
import jax
import jax.numpy as jnp
import numpy as np
from jax.experimental import pallas as pl
from jax.experimental.pallas import tpu as pltpu

HIDDEN = 64          # lstm hidden_layer_size
LSTM_OUT = 8         # lstm_output_size
FEAT = 512           # size of `input`
SEQ = 8              # length of `angles` sequence
G = 4 * HIDDEN       # 256 gate columns

# packed parameter slab row indices
ROW_WIH = 0
ROW_B = 1
ROW_HEAD = 2
ROW_WFC0 = 3
ROW_WFC1 = 4
ROW_CONST = 5
SLAB_ROWS = 6


def stop_kernel(angles_ref,   # VMEM (SEQ, 1)  f32   angle sequence (column)
                x_ref,        # VMEM (2, 256)  f32   `input` reshaped to (2, 256)
                whh_ref,      # VMEM (64, 256) bf16  recurrent weights, (f,i,o,g) cols, f/i/o *0.5
                slab_ref,     # VMEM (6, 256)  f32   packed params (see ROW_*)
                out_ref):     # VMEM (1, 1)    f32
    H = HIDDEN

    wih  = slab_ref[ROW_WIH:ROW_WIH + 1, :]          # (1, 256)
    b    = slab_ref[ROW_B:ROW_B + 1, :]              # (1, 256)
    head = slab_ref[ROW_HEAD:ROW_HEAD + 1, :]        # (1, 256) w_head in lanes 0:64
    wfc  = slab_ref[ROW_WFC0:ROW_WFC1 + 1, :]        # (2, 256)
    cst  = slab_ref[ROW_CONST:ROW_CONST + 1, :]      # (1, 256) const at lane 0

    # ---- independent of the recurrence: hoisted above the serial chain -------
    # 512-wide FC partial: VPU mul + reduce, overlaps with the LSTM prologue.
    prod = x_ref[...] * wfc                                              # (2, 256)
    fc_x = jnp.sum(jnp.sum(prod, axis=0, keepdims=True),
                   axis=1, keepdims=True)                                # (1, 1)

    # Input + bias pre-activations for all timesteps at once: (SEQ, 256).
    pre = angles_ref[...] * wih + b

    whh = whh_ref[...]                                                   # (64, 256) bf16

    # ---- step 0: h = c = 0 -> no recurrent matmul, no f*c term ---------------
    t0 = jnp.tanh(pre[0:1, :])                 # ONE 256-wide EUP push
    s0 = 0.5 * t0 + 0.5                        # = sigmoid(raw) for the 0.5-prescaled f/i/o cols
    c = s0[:, H:2 * H] * t0[:, 3 * H:4 * H]    # i * g
    h = s0[:, 2 * H:3 * H] * jnp.tanh(c)       # o * tanh(c)

    # ---- steps 1..SEQ-1, fully unrolled (SEQ is static) -----------------------
    for step in range(1, SEQ):
        rec = jnp.dot(h.astype(jnp.bfloat16), whh,
                      preferred_element_type=jnp.float32)                # 1 bf16 MXU pass
        gates = pre[step:step + 1, :] + rec                              # (1, 256) f32
        tt = jnp.tanh(gates)                   # ONE 256-wide EUP push per step
        ss = 0.5 * tt + 0.5
        f_g = ss[:, 0:H]
        i_g = ss[:, H:2 * H]
        o_g = ss[:, 2 * H:3 * H]
        g_g = tt[:, 3 * H:4 * H]
        c = f_g * c + i_g * g_g
        h = o_g * jnp.tanh(c)

    # ---- epilogue: folded head + fc + const, then sigmoid ---------------------
    logit = (fc_x
             + jnp.sum(h * head[:, 0:H], axis=1, keepdims=True)
             + cst[:, 0:1])                                              # (1, 1)
    out_ref[...] = 0.5 * (jnp.tanh(0.5 * logit) + 1.0)                   # sigmoid(logit)


def _reorder_and_prescale(w):
    """Last axis is 4H in PyTorch gate order (i, f, g, o).

    Returns (f, i, o, g) column order with the sigmoid gates (f, i, o) pre-scaled
    by 0.5 so that sigmoid(raw) == 0.5 * tanh(prescaled) + 0.5 after a single tanh.
    """
    i, f, g, o = jnp.split(w, 4, axis=-1)
    return jnp.concatenate([0.5 * f, 0.5 * i, 0.5 * o, g], axis=-1)


def prepare_stop_params(params):
    """One-time folding of the PyTorch parameters into the two kernel operands."""
    wih = _reorder_and_prescale(params["wih"].T.reshape(1, G))                  # (1, 256)
    b = _reorder_and_prescale((params["b_ih"] + params["b_hh"]).reshape(1, G))  # (1, 256)
    whh = _reorder_and_prescale(params["whh"].T)                                # (64, 256)

    wfc_x = params["wfc"][0, :FEAT].reshape(2, G)                               # (2, 256)
    wfc_y = params["wfc"][0, FEAT:]                                             # (8,)
    # Fold the LSTM head Linear(64,8) into the final fc:
    #   wfc_y . (W_out h + b_out) + b_fc == h . (W_out^T wfc_y) + (wfc_y.b_out + b_fc)
    w_head = params["wout"].T @ wfc_y                                           # (64,)
    const = jnp.dot(params["bout"], wfc_y) + params["bfc"][0]                   # scalar

    head_row = jnp.zeros((1, G), jnp.float32).at[0, :HIDDEN].set(w_head)
    const_row = jnp.zeros((1, G), jnp.float32).at[0, 0].set(const)

    slab = jnp.concatenate([wih, b, head_row, wfc_x, const_row],
                           axis=0).astype(jnp.float32)                          # (6, 256)
    return {"whh_bf16": whh.astype(jnp.bfloat16), "slab": slab}


@jax.jit
def stop_module_forward(inp, angles, folded):
    """inp: (FEAT,), angles: (SEQ,) -> (1,) sigmoid output."""
    vmem = pl.BlockSpec(memory_space=pltpu.MemorySpace.VMEM)
    out = pl.pallas_call(
        stop_kernel,
        out_shape=jax.ShapeDtypeStruct((1, 1), jnp.float32),
        in_specs=[vmem] * 4,
        out_specs=vmem,
    )(angles.reshape(SEQ, 1).astype(jnp.float32),
      inp.reshape(2, G).astype(jnp.float32),
      folded["whh_bf16"],
      folded["slab"])
    return out.reshape(1)


def stop_module_reference(inp, angles, params):
    """Pure-JAX f32 reference mirroring PyTorch semantics (unfused)."""
    h = jnp.zeros((HIDDEN,), jnp.float32)
    c = jnp.zeros((HIDDEN,), jnp.float32)
    H = HIDDEN
    for t in range(angles.shape[0]):
        gates = (angles[t] * params["wih"][:, 0] + params["whh"] @ h
                 + params["b_ih"] + params["b_hh"])
        i_g = jax.nn.sigmoid(gates[0:H])
        f_g = jax.nn.sigmoid(gates[H:2 * H])
        g_g = jnp.tanh(gates[2 * H:3 * H])
        o_g = jax.nn.sigmoid(gates[3 * H:4 * H])
        c = f_g * c + i_g * g_g
        h = o_g * jnp.tanh(c)
    y = params["wout"] @ h + params["bout"]                    # (8,)
    cat = jnp.concatenate([inp, y])                            # (520,)
    logit = params["wfc"][0] @ cat + params["bfc"][0]
    return jax.nn.sigmoid(logit).reshape(1)


if __name__ == "__main__":
    key = jax.random.PRNGKey(0)
    ks = jax.random.split(key, 9)
    params = {
        # nn.LSTM(input_size=1, hidden_size=64) parameters
        "wih":  0.1 * jax.random.normal(ks[0], (4 * HIDDEN, 1), jnp.float32),
        "whh":  0.1 * jax.random.normal(ks[1], (4 * HIDDEN, HIDDEN), jnp.float32),
        "b_ih": 0.1 * jax.random.normal(ks[2], (4 * HIDDEN,), jnp.float32),
        "b_hh": 0.1 * jax.random.normal(ks[3], (4 * HIDDEN,), jnp.float32),
        # LSTM1D output head: Linear(64, 8)
        "wout": 0.1 * jax.random.normal(ks[4], (LSTM_OUT, HIDDEN), jnp.float32),
        "bout": 0.1 * jax.random.normal(ks[5], (LSTM_OUT,), jnp.float32),
        # fully_connected: Linear(520, 1), bias[0] = -5 per __init__
        "wfc":  0.05 * jax.random.normal(ks[6], (1, FEAT + LSTM_OUT), jnp.float32),
        "bfc":  jnp.array([-5.0], dtype=jnp.float32),
    }
    inp = jax.random.normal(ks[7], (FEAT,), jnp.float32)
    angles = jax.random.normal(ks[8], (SEQ,), jnp.float32)

    # One-time parameter folding (module-init cost, NOT on the per-call path).
    folded = prepare_stop_params(params)

    out = jax.block_until_ready(stop_module_forward(inp, angles, folded))
    ref = jax.block_until_ready(stop_module_reference(inp, angles, params))

    # Tolerance loosened vs f32 reference because the recurrent matmul runs in
    # bf16 (f32 accumulation); observed error is orders of magnitude below this.
    np.testing.assert_allclose(np.asarray(out), np.asarray(ref),
                               rtol=5e-3, atol=1e-6)
    print("KERNEL_OK")
</pallas_src>

<mosaic_0001>
module attributes {stable_mosaic.version = 11 : i64} {
  func.func @stop_kernel(%arg0: memref<8x1xf32, #tpu.memory_space<vmem>>, %arg1: memref<2x256xf32, #tpu.memory_space<vmem>>, %arg2: memref<64x256xbf16, #tpu.memory_space<vmem>>, %arg3: memref<6x256xf32, #tpu.memory_space<vmem>>, %arg4: memref<1x1xf32, #tpu.memory_space<vmem>>) attributes {dimension_semantics = [], scalar_prefetch = 0 : i64, scratch_operands = 0 : i64, tpu.core_type = #tpu.core_type<tc>} {
    %c0 = arith.constant 0 : index
    %c0_0 = arith.constant 0 : index
    %0 = vector.load %arg3[%c0, %c0_0] : memref<6x256xf32, #tpu.memory_space<vmem>>, vector<1x256xf32>
    %c1 = arith.constant 1 : index
    %c0_1 = arith.constant 0 : index
    %1 = vector.load %arg3[%c1, %c0_1] : memref<6x256xf32, #tpu.memory_space<vmem>>, vector<1x256xf32>
    %c2 = arith.constant 2 : index
    %c0_2 = arith.constant 0 : index
    %2 = vector.load %arg3[%c2, %c0_2] : memref<6x256xf32, #tpu.memory_space<vmem>>, vector<1x256xf32>
    %c3 = arith.constant 3 : index
    %c0_3 = arith.constant 0 : index
    %3 = vector.load %arg3[%c3, %c0_3] : memref<6x256xf32, #tpu.memory_space<vmem>>, vector<2x256xf32>
    %c5 = arith.constant 5 : index
    %c0_4 = arith.constant 0 : index
    %4 = vector.load %arg3[%c5, %c0_4] : memref<6x256xf32, #tpu.memory_space<vmem>>, vector<1x256xf32>
    %c0_5 = arith.constant 0 : index
    %c0_6 = arith.constant 0 : index
    %5 = vector.load %arg1[%c0_5, %c0_6] : memref<2x256xf32, #tpu.memory_space<vmem>>, vector<2x256xf32>
    %6 = arith.mulf %5, %3 : vector<2x256xf32>
    %cst = arith.constant dense<0.000000e+00> : vector<256xf32>
    %7 = vector.multi_reduction <add>, %6, %cst [0] : vector<2x256xf32> to vector<256xf32>
    %8 = vector.shape_cast %7 : vector<256xf32> to vector<1x256xf32>
    %cst_7 = arith.constant dense<0.000000e+00> : vector<1xf32>
    %9 = vector.multi_reduction <add>, %8, %cst_7 [1] : vector<1x256xf32> to vector<1xf32>
    %10 = vector.shape_cast %9 : vector<1xf32> to vector<1x1xf32>
    %c0_8 = arith.constant 0 : index
    %c0_9 = arith.constant 0 : index
    %11 = vector.load %arg0[%c0_8, %c0_9] : memref<8x1xf32, #tpu.memory_space<vmem>>, vector<8x1xf32>
    %12 = vector.broadcast %11 : vector<8x1xf32> to vector<8x256xf32>
    %13 = vector.broadcast %0 : vector<1x256xf32> to vector<8x256xf32>
    %14 = arith.mulf %12, %13 : vector<8x256xf32>
    %15 = vector.broadcast %1 : vector<1x256xf32> to vector<8x256xf32>
    %16 = arith.addf %14, %15 : vector<8x256xf32>
    %c0_10 = arith.constant 0 : index
    %c0_11 = arith.constant 0 : index
    %17 = vector.load %arg2[%c0_10, %c0_11] : memref<64x256xbf16, #tpu.memory_space<vmem>>, vector<64x256xbf16>
    %18 = vector.extract_strided_slice %16 {offsets = [0, 0], sizes = [1, 256], strides = [1, 1]} : vector<8x256xf32> to vector<1x256xf32>
    %19 = math.tanh %18 : vector<1x256xf32>
    %cst_12 = arith.constant 5.000000e-01 : f32
    %20 = vector.broadcast %cst_12 : f32 to vector<1x256xf32>
    %21 = arith.mulf %20, %19 : vector<1x256xf32>
    %cst_13 = arith.constant 5.000000e-01 : f32
    %22 = vector.broadcast %cst_13 : f32 to vector<1x256xf32>
    %23 = arith.addf %21, %22 : vector<1x256xf32>
    %24 = vector.extract_strided_slice %23 {offsets = [0, 64], sizes = [1, 64], strides = [1, 1]} : vector<1x256xf32> to vector<1x64xf32>
    %25 = vector.extract_strided_slice %19 {offsets = [0, 192], sizes = [1, 64], strides = [1, 1]} : vector<1x256xf32> to vector<1x64xf32>
    %26 = arith.mulf %24, %25 : vector<1x64xf32>
    %27 = vector.extract_strided_slice %23 {offsets = [0, 128], sizes = [1, 64], strides = [1, 1]} : vector<1x256xf32> to vector<1x64xf32>
    %28 = math.tanh %26 : vector<1x64xf32>
    %29 = arith.mulf %27, %28 : vector<1x64xf32>
    %30 = arith.truncf %29 : vector<1x64xf32> to vector<1x64xbf16>
    %cst_14 = arith.constant dense<0.000000e+00> : vector<1x256xf32>
    %31 = tpu.matmul %30, %17, %cst_14 {dimension_numbers = #tpu.dot_dimension_numbers<[1], [0], [0], [1], [0, 0, 1, 1], [], []>} : vector<1x64xbf16>, vector<64x256xbf16>, vector<1x256xf32> -> vector<1x256xf32>
    %32 = vector.extract_strided_slice %16 {offsets = [1, 0], sizes = [1, 256], strides = [1, 1]} : vector<8x256xf32> to vector<1x256xf32>
    %33 = arith.addf %32, %31 : vector<1x256xf32>
    %34 = math.tanh %33 : vector<1x256xf32>
    %cst_15 = arith.constant 5.000000e-01 : f32
    %35 = vector.broadcast %cst_15 : f32 to vector<1x256xf32>
    %36 = arith.mulf %35, %34 : vector<1x256xf32>
    %cst_16 = arith.constant 5.000000e-01 : f32
    %37 = vector.broadcast %cst_16 : f32 to vector<1x256xf32>
    %38 = arith.addf %36, %37 : vector<1x256xf32>
    %39 = vector.extract_strided_slice %38 {offsets = [0, 0], sizes = [1, 64], strides = [1, 1]} : vector<1x256xf32> to vector<1x64xf32>
    %40 = vector.extract_strided_slice %38 {offsets = [0, 64], sizes = [1, 64], strides = [1, 1]} : vector<1x256xf32> to vector<1x64xf32>
    %41 = vector.extract_strided_slice %38 {offsets = [0, 128], sizes = [1, 64], strides = [1, 1]} : vector<1x256xf32> to vector<1x64xf32>
    %42 = vector.extract_strided_slice %34 {offsets = [0, 192], sizes = [1, 64], strides = [1, 1]} : vector<1x256xf32> to vector<1x64xf32>
    %43 = arith.mulf %39, %26 : vector<1x64xf32>
    %44 = arith.mulf %40, %42 : vector<1x64xf32>
    %45 = arith.addf %43, %44 : vector<1x64xf32>
    %46 = math.tanh %45 : vector<1x64xf32>
    %47 = arith.mulf %41, %46 : vector<1x64xf32>
    %48 = arith.truncf %47 : vector<1x64xf32> to vector<1x64xbf16>
    %cst_17 = arith.constant dense<0.000000e+00> : vector<1x256xf32>
    %49 = tpu.matmul %48, %17, %cst_17 {dimension_numbers = #tpu.dot_dimension_numbers<[1], [0], [0], [1], [0, 0, 1, 1], [], []>} : vector<1x64xbf16>, vector<64x256xbf16>, vector<1x256xf32> -> vector<1x256xf32>
    %50 = vector.extract_strided_slice %16 {offsets = [2, 0], sizes = [1, 256], strides = [1, 1]} : vector<8x256xf32> to vector<1x256xf32>
    %51 = arith.addf %50, %49 : vector<1x256xf32>
    %52 = math.tanh %51 : vector<1x256xf32>
    %cst_18 = arith.constant 5.000000e-01 : f32
    %53 = vector.broadcast %cst_18 : f32 to vector<1x256xf32>
    %54 = arith.mulf %53, %52 : vector<1x256xf32>
    %cst_19 = arith.constant 5.000000e-01 : f32
    %55 = vector.broadcast %cst_19 : f32 to vector<1x256xf32>
    %56 = arith.addf %54, %55 : vector<1x256xf32>
    %57 = vector.extract_strided_slice %56 {offsets = [0, 0], sizes = [1, 64], strides = [1, 1]} : vector<1x256xf32> to vector<1x64xf32>
    %58 = vector.extract_strided_slice %56 {offsets = [0, 64], sizes = [1, 64], strides = [1, 1]} : vector<1x256xf32> to vector<1x64xf32>
    %59 = vector.extract_strided_slice %56 {offsets = [0, 128], sizes = [1, 64], strides = [1, 1]} : vector<1x256xf32> to vector<1x64xf32>
    %60 = vector.extract_strided_slice %52 {offsets = [0, 192], sizes = [1, 64], strides = [1, 1]} : vector<1x256xf32> to vector<1x64xf32>
    %61 = arith.mulf %57, %45 : vector<1x64xf32>
    %62 = arith.mulf %58, %60 : vector<1x64xf32>
    %63 = arith.addf %61, %62 : vector<1x64xf32>
    %64 = math.tanh %63 : vector<1x64xf32>
    %65 = arith.mulf %59, %64 : vector<1x64xf32>
    %66 = arith.truncf %65 : vector<1x64xf32> to vector<1x64xbf16>
    %cst_20 = arith.constant dense<0.000000e+00> : vector<1x256xf32>
    %67 = tpu.matmul %66, %17, %cst_20 {dimension_numbers = #tpu.dot_dimension_numbers<[1], [0], [0], [1], [0, 0, 1, 1], [], []>} : vector<1x64xbf16>, vector<64x256xbf16>, vector<1x256xf32> -> vector<1x256xf32>
    %68 = vector.extract_strided_slice %16 {offsets = [3, 0], sizes = [1, 256], strides = [1, 1]} : vector<8x256xf32> to vector<1x256xf32>
    %69 = arith.addf %68, %67 : vector<1x256xf32>
    %70 = math.tanh %69 : vector<1x256xf32>
    %cst_21 = arith.constant 5.000000e-01 : f32
    %71 = vector.broadcast %cst_21 : f32 to vector<1x256xf32>
    %72 = arith.mulf %71, %70 : vector<1x256xf32>
    %cst_22 = arith.constant 5.000000e-01 : f32
    %73 = vector.broadcast %cst_22 : f32 to vector<1x256xf32>
    %74 = arith.addf %72, %73 : vector<1x256xf32>
    %75 = vector.extract_strided_slice %74 {offsets = [0, 0], sizes = [1, 64], strides = [1, 1]} : vector<1x256xf32> to vector<1x64xf32>
    %76 = vector.extract_strided_slice %74 {offsets = [0, 64], sizes = [1, 64], strides = [1, 1]} : vector<1x256xf32> to vector<1x64xf32>
    %77 = vector.extract_strided_slice %74 {offsets = [0, 128], sizes = [1, 64], strides = [1, 1]} : vector<1x256xf32> to vector<1x64xf32>
    %78 = vector.extract_strided_slice %70 {offsets = [0, 192], sizes = [1, 64], strides = [1, 1]} : vector<1x256xf32> to vector<1x64xf32>
    %79 = arith.mulf %75, %63 : vector<1x64xf32>
    %80 = arith.mulf %76, %78 : vector<1x64xf32>
    %81 = arith.addf %79, %80 : vector<1x64xf32>
    %82 = math.tanh %81 : vector<1x64xf32>
    %83 = arith.mulf %77, %82 : vector<1x64xf32>
    %84 = arith.truncf %83 : vector<1x64xf32> to vector<1x64xbf16>
    %cst_23 = arith.constant dense<0.000000e+00> : vector<1x256xf32>
    %85 = tpu.matmul %84, %17, %cst_23 {dimension_numbers = #tpu.dot_dimension_numbers<[1], [0], [0], [1], [0, 0, 1, 1], [], []>} : vector<1x64xbf16>, vector<64x256xbf16>, vector<1x256xf32> -> vector<1x256xf32>
    %86 = vector.extract_strided_slice %16 {offsets = [4, 0], sizes = [1, 256], strides = [1, 1]} : vector<8x256xf32> to vector<1x256xf32>
    %87 = arith.addf %86, %85 : vector<1x256xf32>
    %88 = math.tanh %87 : vector<1x256xf32>
    %cst_24 = arith.constant 5.000000e-01 : f32
    %89 = vector.broadcast %cst_24 : f32 to vector<1x256xf32>
    %90 = arith.mulf %89, %88 : vector<1x256xf32>
    %cst_25 = arith.constant 5.000000e-01 : f32
    %91 = vector.broadcast %cst_25 : f32 to vector<1x256xf32>
    %92 = arith.addf %90, %91 : vector<1x256xf32>
    %93 = vector.extract_strided_slice %92 {offsets = [0, 0], sizes = [1, 64], strides = [1, 1]} : vector<1x256xf32> to vector<1x64xf32>
    %94 = vector.extract_strided_slice %92 {offsets = [0, 64], sizes = [1, 64], strides = [1, 1]} : vector<1x256xf32> to vector<1x64xf32>
    %95 = vector.extract_strided_slice %92 {offsets = [0, 128], sizes = [1, 64], strides = [1, 1]} : vector<1x256xf32> to vector<1x64xf32>
    %96 = vector.extract_strided_slice %88 {offsets = [0, 192], sizes = [1, 64], strides = [1, 1]} : vector<1x256xf32> to vector<1x64xf32>
    %97 = arith.mulf %93, %81 : vector<1x64xf32>
    %98 = arith.mulf %94, %96 : vector<1x64xf32>
    %99 = arith.addf %97, %98 : vector<1x64xf32>
    %100 = math.tanh %99 : vector<1x64xf32>
    %101 = arith.mulf %95, %100 : vector<1x64xf32>
    %102 = arith.truncf %101 : vector<1x64xf32> to vector<1x64xbf16>
    %cst_26 = arith.constant dense<0.000000e+00> : vector<1x256xf32>
    %103 = tpu.matmul %102, %17, %cst_26 {dimension_numbers = #tpu.dot_dimension_numbers<[1], [0], [0], [1], [0, 0, 1, 1], [], []>} : vector<1x64xbf16>, vector<64x256xbf16>, vector<1x256xf32> -> vector<1x256xf32>
    %104 = vector.extract_strided_slice %16 {offsets = [5, 0], sizes = [1, 256], strides = [1, 1]} : vector<8x256xf32> to vector<1x256xf32>
    %105 = arith.addf %104, %103 : vector<1x256xf32>
    %106 = math.tanh %105 : vector<1x256xf32>
    %cst_27 = arith.constant 5.000000e-01 : f32
    %107 = vector.broadcast %cst_27 : f32 to vector<1x256xf32>
    %108 = arith.mulf %107, %106 : vector<1x256xf32>
    %cst_28 = arith.constant 5.000000e-01 : f32
    %109 = vector.broadcast %cst_28 : f32 to vector<1x256xf32>
    %110 = arith.addf %108, %109 : vector<1x256xf32>
    %111 = vector.extract_strided_slice %110 {offsets = [0, 0], sizes = [1, 64], strides = [1, 1]} : vector<1x256xf32> to vector<1x64xf32>
    %112 = vector.extract_strided_slice %110 {offsets = [0, 64], sizes = [1, 64], strides = [1, 1]} : vector<1x256xf32> to vector<1x64xf32>
    %113 = vector.extract_strided_slice %110 {offsets = [0, 128], sizes = [1, 64], strides = [1, 1]} : vector<1x256xf32> to vector<1x64xf32>
    %114 = vector.extract_strided_slice %106 {offsets = [0, 192], sizes = [1, 64], strides = [1, 1]} : vector<1x256xf32> to vector<1x64xf32>
    %115 = arith.mulf %111, %99 : vector<1x64xf32>
    %116 = arith.mulf %112, %114 : vector<1x64xf32>
    %117 = arith.addf %115, %116 : vector<1x64xf32>
    %118 = math.tanh %117 : vector<1x64xf32>
    %119 = arith.mulf %113, %118 : vector<1x64xf32>
    %120 = arith.truncf %119 : vector<1x64xf32> to vector<1x64xbf16>
    %cst_29 = arith.constant dense<0.000000e+00> : vector<1x256xf32>
    %121 = tpu.matmul %120, %17, %cst_29 {dimension_numbers = #tpu.dot_dimension_numbers<[1], [0], [0], [1], [0, 0, 1, 1], [], []>} : vector<1x64xbf16>, vector<64x256xbf16>, vector<1x256xf32> -> vector<1x256xf32>
    %122 = vector.extract_strided_slice %16 {offsets = [6, 0], sizes = [1, 256], strides = [1, 1]} : vector<8x256xf32> to vector<1x256xf32>
    %123 = arith.addf %122, %121 : vector<1x256xf32>
    %124 = math.tanh %123 : vector<1x256xf32>
    %cst_30 = arith.constant 5.000000e-01 : f32
    %125 = vector.broadcast %cst_30 : f32 to vector<1x256xf32>
    %126 = arith.mulf %125, %124 : vector<1x256xf32>
    %cst_31 = arith.constant 5.000000e-01 : f32
    %127 = vector.broadcast %cst_31 : f32 to vector<1x256xf32>
    %128 = arith.addf %126, %127 : vector<1x256xf32>
    %129 = vector.extract_strided_slice %128 {offsets = [0, 0], sizes = [1, 64], strides = [1, 1]} : vector<1x256xf32> to vector<1x64xf32>
    %130 = vector.extract_strided_slice %128 {offsets = [0, 64], sizes = [1, 64], strides = [1, 1]} : vector<1x256xf32> to vector<1x64xf32>
    %131 = vector.extract_strided_slice %128 {offsets = [0, 128], sizes = [1, 64], strides = [1, 1]} : vector<1x256xf32> to vector<1x64xf32>
    %132 = vector.extract_strided_slice %124 {offsets = [0, 192], sizes = [1, 64], strides = [1, 1]} : vector<1x256xf32> to vector<1x64xf32>
    %133 = arith.mulf %129, %117 : vector<1x64xf32>
    %134 = arith.mulf %130, %132 : vector<1x64xf32>
    %135 = arith.addf %133, %134 : vector<1x64xf32>
    %136 = math.tanh %135 : vector<1x64xf32>
    %137 = arith.mulf %131, %136 : vector<1x64xf32>
    %138 = arith.truncf %137 : vector<1x64xf32> to vector<1x64xbf16>
    %cst_32 = arith.constant dense<0.000000e+00> : vector<1x256xf32>
    %139 = tpu.matmul %138, %17, %cst_32 {dimension_numbers = #tpu.dot_dimension_numbers<[1], [0], [0], [1], [0, 0, 1, 1], [], []>} : vector<1x64xbf16>, vector<64x256xbf16>, vector<1x256xf32> -> vector<1x256xf32>
    %140 = vector.extract_strided_slice %16 {offsets = [7, 0], sizes = [1, 256], strides = [1, 1]} : vector<8x256xf32> to vector<1x256xf32>
    %141 = arith.addf %140, %139 : vector<1x256xf32>
    %142 = math.tanh %141 : vector<1x256xf32>
    %cst_33 = arith.constant 5.000000e-01 : f32
    %143 = vector.broadcast %cst_33 : f32 to vector<1x256xf32>
    %144 = arith.mulf %143, %142 : vector<1x256xf32>
    %cst_34 = arith.constant 5.000000e-01 : f32
    %145 = vector.broadcast %cst_34 : f32 to vector<1x256xf32>
    %146 = arith.addf %144, %145 : vector<1x256xf32>
    %147 = vector.extract_strided_slice %146 {offsets = [0, 0], sizes = [1, 64], strides = [1, 1]} : vector<1x256xf32> to vector<1x64xf32>
    %148 = vector.extract_strided_slice %146 {offsets = [0, 64], sizes = [1, 64], strides = [1, 1]} : vector<1x256xf32> to vector<1x64xf32>
    %149 = vector.extract_strided_slice %146 {offsets = [0, 128], sizes = [1, 64], strides = [1, 1]} : vector<1x256xf32> to vector<1x64xf32>
    %150 = vector.extract_strided_slice %142 {offsets = [0, 192], sizes = [1, 64], strides = [1, 1]} : vector<1x256xf32> to vector<1x64xf32>
    %151 = arith.mulf %147, %135 : vector<1x64xf32>
    %152 = arith.mulf %148, %150 : vector<1x64xf32>
    %153 = arith.addf %151, %152 : vector<1x64xf32>
    %154 = math.tanh %153 : vector<1x64xf32>
    %155 = arith.mulf %149, %154 : vector<1x64xf32>
    %156 = vector.extract_strided_slice %2 {offsets = [0, 0], sizes = [1, 64], strides = [1, 1]} : vector<1x256xf32> to vector<1x64xf32>
    %157 = arith.mulf %155, %156 : vector<1x64xf32>
    %cst_35 = arith.constant dense<0.000000e+00> : vector<1xf32>
    %158 = vector.multi_reduction <add>, %157, %cst_35 [1] : vector<1x64xf32> to vector<1xf32>
    %159 = vector.shape_cast %158 : vector<1xf32> to vector<1x1xf32>
    %160 = arith.addf %10, %159 : vector<1x1xf32>
    %161 = vector.extract_strided_slice %4 {offsets = [0, 0], sizes = [1, 1], strides = [1, 1]} : vector<1x256xf32> to vector<1x1xf32>
    %162 = arith.addf %160, %161 : vector<1x1xf32>
    %cst_36 = arith.constant 5.000000e-01 : f32
    %163 = vector.broadcast %cst_36 : f32 to vector<1x1xf32>
    %164 = arith.mulf %163, %162 : vector<1x1xf32>
    %165 = math.tanh %164 : vector<1x1xf32>
    %cst_37 = arith.constant 1.000000e+00 : f32
    %166 = vector.broadcast %cst_37 : f32 to vector<1x1xf32>
    %167 = arith.addf %165, %166 : vector<1x1xf32>
    %cst_38 = arith.constant 5.000000e-01 : f32
    %168 = vector.broadcast %cst_38 : f32 to vector<1x1xf32>
    %169 = arith.mulf %168, %167 : vector<1x1xf32>
    %c0_39 = arith.constant 0 : index
    %c0_40 = arith.constant 0 : index
    %170 = vector.load %arg4[%c0_39, %c0_40] : memref<1x1xf32, #tpu.memory_space<vmem>>, vector<1x1xf32>
    tpu.vector_store %arg4[%c0_39, %c0_40], %169 {strides = array<i32>} : memref<1x1xf32, #tpu.memory_space<vmem>>, vector<1x1xf32>,
    return
  }
}

</mosaic_0001>

<bundles_post_ra>
// kernel: stop_module_forward.1
= control target key start
LH: loop header
LB: loop body
LE: loop exit
PB: predicated region body
PF: predicated region fallthrough
CT: control target
= control target key end

     0   :  { %9 = vsyncpa [#allocation3], 0  ;;  %s1079_s0 = inlined_call_operand.vmem [shape: f32[8,1], index: 0, kind: input, shape index: {}]   ;;  %s1080_s1 = inlined_call_operand.vmem [shape: f32[2,256], index: 1, kind: input, shape index: {}]   ;;  %s1081_s2 = inlined_call_operand.hbm [shape: bf16[64,256], index: 2, kind: input, shape index: {}]   ;;  %s1082_s3 = inlined_call_operand.vmem [shape: f32[6,256], index: 3, kind: input, shape index: {}]   ;;  %s1083_s4 = inlined_call_operand.hbm [shape: f32[1,1], index: 4, kind: output, shape index: {}]  }
   0x1   :  { %10 = vsyncpa [#allocation4], 0  ;;  %s890_s15 = smov [#allocation2]  }
   0x2   :  { %s20_s16 = sshll.u32 %s890_s15, 4  ;;  %s21_s16 = int_to_ptr.vmem [resolvable:$true] %s20_s16 }
   0x3   :  { %s854_s17 = scalar_lea.vmem %s21_s16, 1024  ;;  %p859_p1 = scmp.lt.s32.totalorder %s21_s16, %s21_s16 }
   0x4   :  { %p855_p0 = scmp.ne.s32.totalorder %s21_s16, %s854_s17  ;;  %p860_p2 = scmp.lt.s32.totalorder %s854_s17, %s854_s17 }
   0x6   :  { %p861_p3 = por %p860_p2, %p859_p1 }
   0x8   :  { %p862_p4 = pnand %p861_p3, %p855_p0 }
   0xa   :  { %865 = shalt.err (!%p862_p4)
}
   0xb   :  { %s891_s18 = smov 128   ;;  %s892_s19 = smov 8  }
   0xc   :  { %26 = dma.hbm_to_vmem [thread:$0]  %s1081_s2, 1024, %s21_s16, [#allocation3], %s891_s18, %s891_s18, %s892_s19  }
   0xd   :  { %886 = dma.done.wait [#allocation3], 1024  }
   0xe   :  { %887 = vsyncadd [#allocation3], 4294966272  ;;  %v893_v0 = vmov 0   ;;  %v104_v1 = vld [vmem:[%s1079_s0] sm:$0xff]  ;;  %v50_v2 = vlaneseq  ;;  %v951_v17 = vld [vmem:[#allocation2 + $0x34] ss:$8 sps:$4 sm:$0xff]  }
   0xf   :  { %780 = vset.pattern.permute.xlu0 %v893_v0  ;;  %234 = vmatprep.mubr.bf16.mxu0 %v893_v0  ;;  %v33_v6 = vld [vmem:[%s1082_s3] ss:$8 sm:$0x3]  ;;  %v754_v7 = vld [vmem:[%s1082_s3 + $0x1] ss:$8 sm:$0x3] }
  0x10   :  { %310 = vmatprep.mubr.bf16.mxu1 %v893_v0  ;;  %107 = vperm.xlu0 %780, %v104_v1   ;;  %v931_v3 = vshrl.u32 %v50_v2, 7  ;;  %v953_v18 = vld [vmem:[#allocation2 + $0x30] ss:$8 sps:$4 sm:$0xff]   ;;  %v955_v19 = vld [vmem:[#allocation2 + $0x24] ss:$8 sps:$4 sm:$0xff]   ;;  %s894_s0 = smov 64  }
  0x11   :  { %210 = vmatprep.subr.bf16.mxu0 %v951_v17  ;;  %286 = vmatprep.subr.bf16.mxu1 %v951_v17  ;;  %v960_v20 = vld [vmem:[#allocation2 + $0x20] ss:$8 sps:$4 sm:$0xff]   ;;  %v964_v21 = vld [vmem:[#allocation2 + $0x14] ss:$8 sps:$4 sm:$0xff]   ;;  %v968_v24 = vld [vmem:[#allocation2 + $0x10] ss:$8 sps:$4 sm:$0xff]  }
  0x12   :  { %v934_v4 = vsub.s32 0, %v931_v3  ;;  %v117_v5 = vsub.s32 1, %v931_v3  ;;  %211 = vmatpush1.bf16.msra.mxu0 %v953_v18  ;;  %287 = vmatpush1.bf16.msra.mxu1 %v953_v18  ;;  %v975_v29 = vld [vmem:[#allocation2 + $0x4] ss:$8 sps:$4 sm:$0xff]   ;;  %v977_v30 = vld [vmem:[#allocation2] ss:$8 sps:$4 sm:$0xff]  }
  0x13   :  { %212 = vmatprep.subr.bf16.mxu0 %v955_v19  ;;  %288 = vmatprep.subr.bf16.mxu1 %v955_v19  ;;  %vm198_vm0 = vcmask 523264   ;;  %vm62_vm1 = vcmask 1040384   ;;  %vm63_vm2 = vcmask 1042434   ;;  %vm65_vm4 = vcmask 1044484   ;;  %s896_s10 = smov [#allocation5]  }
  0x14   :  { %v114_v8 = vrot.slane %v33_v6, %v934_v4  ;;  %v118_v9 = vrot.slane %v33_v6, %v117_v5  ;;  %v127_v10 = vrot.slane %v754_v7, %v934_v4  ;;  %v131_v14 = vrot.slane %v754_v7, %v117_v5  ;;  %vm64_vm3 = vmor %vm62_vm1, %vm63_vm2  ;;  %s745_s11 = sshll.u32 %s896_s10, 4  ;;  %s746_s11 = int_to_ptr.vmem [resolvable:$true] %s745_s11 }
  0x15   :  { %vm66_vm5 = vmor %vm64_vm3, %vm65_vm4  ;;  %vm67_vm6 = vcmask 1046534   ;;  %vm86_vm8 = vcmask 1041408   ;;  %vm721_vm9 = vcmask 523271   ;;  %vm737_vm10 = vcmask 7175   ;;  %s866_s12 = scalar_lea.vmem %s746_s11, 16  ;;  %s870_s13 = scalar_lea.vmem %s746_s11, 32 }
  0x16   :  { %213 = vmatpush1.bf16.msra.mxu0 %v960_v20  ;;  %289 = vmatpush1.bf16.msra.mxu1 %v960_v20  ;;  %vm68_vm7 = vmor %vm66_vm5, %vm67_vm6  ;;  %p867_p5 = scmp.ne.s32.totalorder %s746_s11, %s866_s12  ;;  %p871_p6 = scmp.lt.s32.totalorder %s746_s11, %s746_s11 }
  0x17   :  { %214 = vmatprep.subr.bf16.mxu0 %v964_v21  ;;  %290 = vmatprep.subr.bf16.mxu1 %v964_v21  ;;  %p872_p7 = scmp.lt.s32.totalorder %s870_s13, %s866_s12 }
  0x19   :  { %p873_p8 = por %p872_p7, %p871_p6 }
  0x1a   :  { %215 = vmatpush1.bf16.msra.mxu0 %v968_v24  ;;  %291 = vmatpush1.bf16.msra.mxu1 %v968_v24 }
  0x1b   :  { %216 = vmatprep.subr.bf16.mxu0 %v975_v29  ;;  %292 = vmatprep.subr.bf16.mxu1 %v975_v29  ;;  %p874_p9 = pnand %p873_p8, %p867_p5 }
  0x1e   :  { %217 = vmatpush1.bf16.msra.mxu0 %v977_v30  ;;  %293 = vmatpush1.bf16.msra.mxu1 %v977_v30 }
  0x1f   :  { %359 = vmatprep.subr.bf16.mxu0 %v951_v17  ;;  %434 = vmatprep.subr.bf16.mxu1 %v951_v17 }
  0x8b   :  { %v108_v11 = vpop.permute.xlu0 %107 }
  0x8c   :  { %v121_v12 = vmul.f32 %v114_v8, %v108_v11  ;;  %v122_v13 = vmul.f32 %v118_v9, %v108_v11 }
  0x8e   :  { %v945_v15 = vadd.f32 %v127_v10, %v121_v12  ;;  %v947_v16 = vadd.f32 %v131_v14, %v122_v13 }
  0x90   :  { %796 = vtanh.f32 %v945_v15 }
  0x91   :  { %798 = vtanh.f32 %v947_v16 }
  0x9d   :  { %v797_v22 = vpop.eup %796 }
  0x9e   :  { %v146_v23 = vmul.f32 0.5, %v797_v22  ;;  %v799_v26 = vpop.eup %798 }
  0x9f   :  { %v147_v32 = vmul.f32 0.5, %v799_v26 }
  0xa0   :  { %v148_v25 = vadd.f32 0.5, %v146_v23 }
  0xa1   :  { %v149_v33 = vadd.f32 0.5, %v147_v32 }
  0xa2   :  { %v150_v27 = vmul.f32 %v799_v26, %v148_v25 }
  0xa4   :  { %v258_v28 = vrot.slane %v150_v27, 7  ;;  %800 = vtanh.f32 %v150_v27 }
  0xa6   :  { %259 = vrot.lane.b32.xlu1 %v258_v28, %s894_s0 }
  0xb1   :  { %v801_v31 = vpop.eup %800 }
  0xb2   :  { %153 = vrot.lane.b32.xlu0 %v801_v31, %s894_s0 }
 0x118   :  { %v260_v50 = vpop.permute.xlu1 %259 }
 0x124   :  { %v154_v34 = vpop.permute.xlu0 %153 }
 0x125   :  { %v156_v35 = vmul.f32 %v154_v34, %v149_v33 }
 0x127   :  { %v157_v36 = vpack.c.bf16 %v156_v35, %v156_v35 }
 0x129   :  { %766 = vmatmul.mubr.msk.bf16.vlgmr.msra.gmra.mxu0 %vm198_vm0, %v157_v36 }
 0x12a   :  { %360 = vmatpush1.bf16.msra.mxu0 %v953_v18  ;;  %383 = vmatprep.mubr.bf16.mxu0 %v893_v0 }
 0x12b   :  { %361 = vmatprep.subr.bf16.mxu0 %v955_v19 }
 0x12e   :  { %362 = vmatpush1.bf16.msra.mxu0 %v960_v20 }
 0x12f   :  { %363 = vmatprep.subr.bf16.mxu0 %v964_v21 }
 0x132   :  { %364 = vmatpush1.bf16.msra.mxu0 %v968_v24 }
 0x133   :  { %365 = vmatprep.subr.bf16.mxu0 %v975_v29 }
 0x136   :  { %366 = vmatpush1.bf16.msra.mxu0 %v977_v30 }
 0x137   :  { %507 = vmatprep.subr.bf16.mxu0 %v951_v17 }
 0x1e9   :  { %v236_v37 = vpop.f32.mrf.mxu0 }
 0x1ea   :  { %v245_v38 = vrot.slane %v236_v37, 7 }
 0x1eb   :  { %v238_v39 = vpop.f32.mrf.mxu0 }
 0x1ec   :  { %v249_v40 = vadd.f32 %v245_v38, %v945_v15  ;;  %v246_v41 = vrot.slane %v238_v39, 7 }
 0x1ed   :  { %v240_v42 = vpop.f32.mrf.mxu0 }
 0x1ee   :  { %802 = vtanh.f32 %v249_v40  ;;  %v250_v43 = vadd.f32 %v246_v41, %v947_v16 }
 0x1ef   :  { %v241_v44 = vpop.f32.mrf.mxu0 }
 0x1f0   :  { %804 = vtanh.f32 %v250_v43 }
 0x1fb   :  { %v803_v45 = vpop.eup %802 }
 0x1fc   :  { %v253_v46 = vmul.f32 0.5, %v803_v45 }
 0x1fd   :  { %v805_v48 = vpop.eup %804 }
 0x1fe   :  { %v255_v47 = vadd.f32 0.5, %v253_v46  ;;  %v254_v54 = vmul.f32 0.5, %v805_v48 }
 0x200   :  { %v263_v49 = vmul.f32 %v805_v48, %v255_v47  ;;  %v262_v51 = vmul.f32 %v260_v50, %v255_v47  ;;  %v256_v55 = vadd.f32 0.5, %v254_v54 }
 0x202   :  { %265 = vrot.lane.b32.xlu1 %v263_v49, %s894_s0 }
 0x274   :  { %v266_v52 = vpop.permute.xlu1 %265 }
 0x275   :  { %v268_v53 = vadd.f32 %v266_v52, %v262_v51 }
 0x277   :  { %806 = vtanh.f32 %v268_v53  ;;  %v334_v9 = vrot.slane %v268_v53, 7 }
 0x284   :  { %v807_v56 = vpop.eup %806 }
 0x285   :  { %v270_v57 = vmul.f32 %v807_v56, %v256_v55 }
 0x287   :  { %v271_v58 = vpack.c.bf16 %v270_v57, %v270_v57 }
 0x289   :  { %v273_v59 = vshrl.u32 %v271_v58, 16 }
 0x28b   :  { %767 = vmatmul.mubr.msk.bf16.vlgmr.msra.gmra.mxu1 %vm198_vm0, %v273_v59 }
 0x28c   :  { %435 = vmatpush1.bf16.msra.mxu1 %v953_v18  ;;  %458 = vmatprep.mubr.bf16.mxu1 %v893_v0 }
 0x28d   :  { %436 = vmatprep.subr.bf16.mxu1 %v955_v19 }
 0x290   :  { %437 = vmatpush1.bf16.msra.mxu1 %v960_v20 }
 0x291   :  { %438 = vmatprep.subr.bf16.mxu1 %v964_v21 }
 0x294   :  { %439 = vmatpush1.bf16.msra.mxu1 %v968_v24 }
 0x295   :  { %440 = vmatprep.subr.bf16.mxu1 %v975_v29 }
 0x298   :  { %441 = vmatpush1.bf16.msra.mxu1 %v977_v30 }
 0x299   :  { %582 = vmatprep.subr.bf16.mxu1 %v951_v17 }
 0x34b   :  { %v312_v60 = vpop.f32.mrf.mxu1 }
 0x34c   :  { %v321_v61 = vrot.slane %v312_v60, 6 }
 0x34d   :  { %v314_v62 = vpop.f32.mrf.mxu1 }
 0x34e   :  { %v325_v63 = vadd.f32 %v321_v61, %v945_v15  ;;  %v322_v1 = vrot.slane %v314_v62, 6 }
 0x34f   :  { %v316_v2 = vpop.f32.mrf.mxu1 }
 0x350   :  { %808 = vtanh.f32 %v325_v63  ;;  %v326_v5 = vadd.f32 %v322_v1, %v947_v16 }
 0x351   :  { %v317_v6 = vpop.f32.mrf.mxu1 }
 0x352   :  { %810 = vtanh.f32 %v326_v5 }
 0x35d   :  { %v809_v7 = vpop.eup %808 }
 0x35e   :  { %v329_v8 = vmul.f32 0.5, %v809_v7 }
 0x35f   :  { %v811_v11 = vpop.eup %810 }
 0x360   :  { %v331_v10 = vadd.f32 0.5, %v329_v8  ;;  %v330_v23 = vmul.f32 0.5, %v811_v11 }
 0x362   :  { %v337_v12 = vmul.f32 %v811_v11, %v331_v10  ;;  %v336_v13 = vmul.f32 %v334_v9, %v331_v10  ;;  %v332_v25 = vadd.f32 0.5, %v330_v23 }
 0x364   :  { %339 = vrot.lane.b32.xlu0 %v337_v12, %s894_s0 }
 0x3d6   :  { %v340_v14 = vpop.permute.xlu0 %339 }
 0x3d7   :  { %v342_v22 = vadd.f32 %v340_v14, %v336_v13 }
 0x3d9   :  { %812 = vtanh.f32 %v342_v22  ;;  %v407_v42 = vrot.slane %v342_v22, 7 }
 0x3e6   :  { %v813_v26 = vpop.eup %812 }
 0x3e7   :  { %v344_v27 = vmul.f32 %v813_v26, %v332_v25 }
 0x3e9   :  { %v345_v28 = vpack.c.bf16 %v344_v27, %v344_v27 }
 0x3eb   :  { %v347_v31 = vrot.slane %v345_v28, 1 }
 0x3ed   :  { %768 = vmatmul.mubr.msk.bf16.vlgmr.msra.gmra.mxu0 %vm198_vm0, %v347_v31 }
 0x3ee   :  { %508 = vmatpush1.bf16.msra.mxu0 %v953_v18  ;;  %531 = vmatprep.mubr.bf16.mxu0 %v893_v0 }
 0x3ef   :  { %509 = vmatprep.subr.bf16.mxu0 %v955_v19 }
 0x3f2   :  { %510 = vmatpush1.bf16.msra.mxu0 %v960_v20 }
 0x3f3   :  { %511 = vmatprep.subr.bf16.mxu0 %v964_v21 }
 0x3f6   :  { %512 = vmatpush1.bf16.msra.mxu0 %v968_v24 }
 0x3f7   :  { %513 = vmatprep.subr.bf16.mxu0 %v975_v29 }
 0x3fa   :  { %514 = vmatpush1.bf16.msra.mxu0 %v977_v30 }
 0x3fb   :  { %655 = vmatprep.subr.bf16.mxu0 %v951_v17 }
 0x4ad   :  { %v385_v32 = vpop.f32.mrf.mxu0 }
 0x4ae   :  { %v394_v33 = vrot.slane %v385_v32, 5 }
 0x4af   :  { %v387_v34 = vpop.f32.mrf.mxu0 }
 0x4b0   :  { %v398_v35 = vadd.f32 %v394_v33, %v945_v15  ;;  %v395_v36 = vrot.slane %v387_v34, 5 }
 0x4b1   :  { %v389_v37 = vpop.f32.mrf.mxu0 }
 0x4b2   :  { %814 = vtanh.f32 %v398_v35  ;;  %v399_v38 = vadd.f32 %v395_v36, %v947_v16 }
 0x4b3   :  { %v390_v39 = vpop.f32.mrf.mxu0 }
 0x4b4   :  { %816 = vtanh.f32 %v399_v38 }
 0x4bf   :  { %v815_v40 = vpop.eup %814 }
 0x4c0   :  { %v402_v41 = vmul.f32 0.5, %v815_v40 }
 0x4c1   :  { %v817_v44 = vpop.eup %816 }
 0x4c2   :  { %v404_v43 = vadd.f32 0.5, %v402_v41  ;;  %v403_v48 = vmul.f32 0.5, %v817_v44 }
 0x4c4   :  { %v410_v45 = vmul.f32 %v817_v44, %v404_v43  ;;  %v409_v46 = vmul.f32 %v407_v42, %v404_v43  ;;  %v405_v49 = vadd.f32 0.5, %v403_v48 }
 0x4c6   :  { %412 = vrot.lane.b32.xlu1 %v410_v45, %s894_s0 }
 0x538   :  { %v413_v17 = vpop.permute.xlu1 %412 }
 0x539   :  { %v415_v47 = vadd.f32 %v413_v17, %v409_v46 }
 0x53b   :  { %818 = vtanh.f32 %v415_v47  ;;  %v482_v2 = vrot.slane %v415_v47, 7 }
 0x548   :  { %v819_v50 = vpop.eup %818 }
 0x549   :  { %v417_v51 = vmul.f32 %v819_v50, %v405_v49 }
 0x54b   :  { %v418_v52 = vpack.c.bf16 %v417_v51, %v417_v51 }
 0x54d   :  { %v420_v53 = vshrl.u32 %v418_v52, 16 }
 0x54f   :  { %v422_v54 = vrot.slane %v420_v53, 1 }
 0x551   :  { %769 = vmatmul.mubr.msk.bf16.vlgmr.msra.gmra.mxu1 %vm198_vm0, %v422_v54 }
 0x552   :  { %583 = vmatpush1.bf16.msra.mxu1 %v953_v18  ;;  %606 = vmatprep.mubr.bf16.mxu1 %v893_v0 }
 0x553   :  { %584 = vmatprep.subr.bf16.mxu1 %v955_v19 }
 0x556   :  { %585 = vmatpush1.bf16.msra.mxu1 %v960_v20 }
 0x557   :  { %586 = vmatprep.subr.bf16.mxu1 %v964_v21 }
 0x55a   :  { %587 = vmatpush1.bf16.msra.mxu1 %v968_v24 }
 0x55b   :  { %588 = vmatprep.subr.bf16.mxu1 %v975_v29 }
 0x55e   :  { %589 = vmatpush1.bf16.msra.mxu1 %v977_v30 }
 0x611   :  { %v460_v55 = vpop.f32.mrf.mxu1 }
 0x612   :  { %v469_v56 = vrot.slane %v460_v55, 4 }
 0x613   :  { %v462_v57 = vpop.f32.mrf.mxu1 }
 0x614   :  { %v473_v58 = vadd.f32 %v469_v56, %v945_v15  ;;  %v470_v59 = vrot.slane %v462_v57, 4 }
 0x615   :  { %v464_v60 = vpop.f32.mrf.mxu1 }
 0x616   :  { %820 = vtanh.f32 %v473_v58  ;;  %v474_v61 = vadd.f32 %v470_v59, %v947_v16 }
 0x617   :  { %v465_v62 = vpop.f32.mrf.mxu1 }
 0x618   :  { %822 = vtanh.f32 %v474_v61 }
 0x623   :  { %v821_v63 = vpop.eup %820 }
 0x624   :  { %v477_v1 = vmul.f32 0.5, %v821_v63 }
 0x625   :  { %v823_v6 = vpop.eup %822 }
 0x626   :  { %v479_v5 = vadd.f32 0.5, %v477_v1  ;;  %v478_v11 = vmul.f32 0.5, %v823_v6 }
 0x628   :  { %v485_v7 = vmul.f32 %v823_v6, %v479_v5  ;;  %v484_v8 = vmul.f32 %v482_v2, %v479_v5  ;;  %v480_v12 = vadd.f32 0.5, %v478_v11  ;;  %v895_v2 = vmov 1983009808  }
 0x629   :  { %v48_v5 = vunpack.c.l.s4 %v895_v2 }
 0x62a   :  { %487 = vrot.lane.b32.xlu0 %v485_v7, %s894_s0 }
 0x62b   :  { %v49_v6 = vunpack.c.0.s8 %v48_v5 }
 0x69c   :  { %v488_v9 = vpop.permute.xlu0 %487 }
 0x69d   :  { %v490_v10 = vadd.f32 %v488_v9, %v484_v8  ;;  %v52_v9 = vsub.s32 %v49_v6, %v931_v3 }
 0x69f   :  { %824 = vtanh.f32 %v490_v10  ;;  %v555_v32 = vrot.slane %v490_v10, 7 }
 0x6ac   :  { %v825_v13 = vpop.eup %824 }
 0x6ad   :  { %v492_v14 = vmul.f32 %v825_v13, %v480_v12 }
 0x6af   :  { %v493_v22 = vpack.c.bf16 %v492_v14, %v492_v14  ;;  %v793_v14 = vld [vmem:[%s1082_s3] ss:$8 sps:$4 sm:$0x88]  }
 0x6b1   :  { %v495_v23 = vrot.slane %v493_v22, 2 }
 0x6b3   :  { %770 = vmatmul.mubr.msk.bf16.vlgmr.msra.gmra.mxu0 %vm198_vm0, %v495_v23 }
 0x6b4   :  { %656 = vmatpush1.bf16.msra.mxu0 %v953_v18  ;;  %679 = vmatprep.mubr.bf16.mxu0 %v893_v0 }
 0x6b5   :  { %657 = vmatprep.subr.bf16.mxu0 %v955_v19 }
 0x6b8   :  { %658 = vmatpush1.bf16.msra.mxu0 %v960_v20 }
 0x6b9   :  { %659 = vmatprep.subr.bf16.mxu0 %v964_v21 }
 0x6bc   :  { %660 = vmatpush1.bf16.msra.mxu0 %v968_v24 }
 0x6bd   :  { %661 = vmatprep.subr.bf16.mxu0 %v975_v29 }
 0x6c0   :  { %662 = vmatpush1.bf16.msra.mxu0 %v977_v30 }
 0x773   :  { %v533_v25 = vpop.f32.mrf.mxu0 }
 0x774   :  { %v542_v26 = vrot.slane %v533_v25, 3  ;;  %v795_v25 = vld [vmem:[%s1082_s3 + $0x4] ss:$8 sps:$4 sm:$0x11]  }
 0x775   :  { %v535_v27 = vpop.f32.mrf.mxu0 }
 0x776   :  { %v546_v28 = vadd.f32 %v542_v26, %v945_v15  ;;  %v543_v18 = vrot.slane %v535_v27, 3  ;;  %v53_v26 = vrot.slane %v793_v14, %v52_v9  ;;  %v60_v27 = vrot.slane %v795_v25, %v52_v9 }
 0x777   :  { %v537_v31 = vpop.f32.mrf.mxu0 }
 0x778   :  { %826 = vtanh.f32 %v546_v28  ;;  %v547_v0 = vadd.f32 %v543_v18, %v947_v16  ;;  %v61_v3 = vcombine.high %v53_v26, %v53_v26  ;;  %v71_v28 = vrot.slane %v60_v27, 7 }
 0x779   :  { %v538_v19 = vpop.f32.mrf.mxu0 }
 0x77a   :  { %828 = vtanh.f32 %v547_v0 }
 0x785   :  { %v827_v20 = vpop.eup %826 }
 0x786   :  { %v550_v21 = vmul.f32 0.5, %v827_v20 }
 0x787   :  { %v829_v33 = vpop.eup %828 }
 0x788   :  { %v552_v24 = vadd.f32 0.5, %v550_v21  ;;  %v551_v36 = vmul.f32 0.5, %v829_v33 }
 0x78a   :  { %v558_v29 = vmul.f32 %v829_v33, %v552_v24  ;;  %v557_v34 = vmul.f32 %v555_v32, %v552_v24  ;;  %v553_v37 = vadd.f32 0.5, %v551_v36 }
 0x78c   :  { %560 = vrot.lane.b32.xlu1 %v558_v29, %s894_s0 }
 0x7fe   :  { %v561_v30 = vpop.permute.xlu1 %560 }
 0x7ff   :  { %v563_v35 = vadd.f32 %v561_v30, %v557_v34 }
 0x801   :  { %830 = vtanh.f32 %v563_v35  ;;  %v630_v52 = vrot.slane %v563_v35, 7 }
 0x80e   :  { %v831_v38 = vpop.eup %830 }
 0x80f   :  { %v565_v39 = vmul.f32 %v831_v38, %v553_v37 }
 0x811   :  { %v566_v40 = vpack.c.bf16 %v565_v39, %v565_v39 }
 0x813   :  { %v568_v41 = vshrl.u32 %v566_v40, 16 }
 0x815   :  { %v570_v42 = vrot.slane %v568_v41, 2 }
 0x817   :  { %771 = vmatmul.mubr.msk.bf16.vlgmr.msra.gmra.mxu1 %vm198_vm0, %v570_v42 }
 0x8d7   :  { %v608_v43 = vpop.f32.mrf.mxu1 }
 0x8d8   :  { %v617_v44 = vrot.slane %v608_v43, 2 }
 0x8d9   :  { %v610_v45 = vpop.f32.mrf.mxu1 }
 0x8da   :  { %v621_v46 = vadd.f32 %v617_v44, %v945_v15  ;;  %v618_v17 = vrot.slane %v610_v45, 2 }
 0x8db   :  { %v612_v47 = vpop.f32.mrf.mxu1 }
 0x8dc   :  { %832 = vtanh.f32 %v621_v46  ;;  %v622_v48 = vadd.f32 %v618_v17, %v947_v16 }
 0x8dd   :  { %v613_v49 = vpop.f32.mrf.mxu1 }
 0x8de   :  { %834 = vtanh.f32 %v622_v48 }
 0x8e9   :  { %v833_v50 = vpop.eup %832 }
 0x8ea   :  { %v625_v51 = vmul.f32 0.5, %v833_v50 }
 0x8eb   :  { %v835_v54 = vpop.eup %834 }
 0x8ec   :  { %v627_v53 = vadd.f32 0.5, %v625_v51  ;;  %v626_v59 = vmul.f32 0.5, %v835_v54  ;;  %v755_v51 = vld [vmem:[%s1082_s3 + $0x2] ss:$8 sm:$0x3] }
 0x8ee   :  { %v633_v55 = vmul.f32 %v835_v54, %v627_v53  ;;  %v632_v56 = vmul.f32 %v630_v52, %v627_v53  ;;  %v628_v60 = vadd.f32 0.5, %v626_v59  ;;  %v718_v53 = vrot.slane %v755_v51, %v934_v4 }
 0x8f0   :  { %635 = vrot.lane.b32.xlu0 %v633_v55, %s894_s0 }
 0x962   :  { %v636_v57 = vpop.permute.xlu0 %635 }
 0x963   :  { %v638_v58 = vadd.f32 %v636_v57, %v632_v56 }
 0x965   :  { %836 = vtanh.f32 %v638_v58  ;;  %v703_v30 = vrot.slane %v638_v58, 7  ;;  %v756_v58 = vld [vmem:[%s1082_s3 + $0x5] ss:$8 sm:$0x3] }
 0x972   :  { %v837_v61 = vpop.eup %836 }
 0x973   :  { %v640_v62 = vmul.f32 %v837_v61, %v628_v60  ;;  %v730_v60 = vrot.slane %v756_v58, %v934_v4 }
 0x975   :  { %v641_v63 = vpack.c.bf16 %v640_v62, %v640_v62 }
 0x977   :  { %v643_v1 = vrot.slane %v641_v63, 3 }
 0x979   :  { %772 = vmatmul.mubr.msk.bf16.vlgmr.msra.gmra.mxu0 %vm198_vm0, %v643_v1 }
 0xa39   :  { %v681_v7 = vpop.f32.mrf.mxu0 }
 0xa3a   :  { %v690_v8 = vrot.slane %v681_v7, 1 }
 0xa3b   :  { %v683_v10 = vpop.f32.mrf.mxu0 }
 0xa3c   :  { %v694_v11 = vadd.f32 %v690_v8, %v945_v15  ;;  %v691_v12 = vrot.slane %v683_v10, 1  ;;  %v757_v15 = vrot.slane %v61_v3, 9 }
 0xa3d   :  { %v685_v13 = vpop.f32.mrf.mxu0 }
 0xa3e   :  { %838 = vtanh.f32 %v694_v11  ;;  %v695_v22 = vadd.f32 %v691_v12, %v947_v16  ;;  %v42_v16 = vld [vmem:[%s1080_s1] sm:$0xf]  ;;  %v72_v18 = vsel %vm68_vm7, %v757_v15, %v71_v28 }
 0xa3f   :  { %v686_v23 = vpop.f32.mrf.mxu0  ;;  %v74_v31 = vmul.f32 %v72_v18, %v42_v16 }
 0xa40   :  { %840 = vtanh.f32 %v695_v22 }
 0xa41   :  { %v82_v0 = vrot.slane %v74_v31, %v52_v9 }
 0xa43   :  { %v83_v19 = vcombine.high %v82_v0, %v82_v0  ;;  %v87_v20 = vsel %vm86_vm8, %v82_v0, 0.0 }
 0xa44   :  { %v88_v32 = vrot.slane %v87_v20, 4 }
 0xa45   :  { %v94_v33 = vsel %vm86_vm8, %v83_v19, 0.0 }
 0xa46   :  { %v89_v29 = vadd.f32 %v88_v32, %v87_v20  ;;  %v95_v34 = vrot.slane %v94_v33, 4 }
 0xa48   :  { %v90_v37 = vrot.slane %v89_v29, 2  ;;  %v96_v38 = vadd.f32 %v95_v34, %v94_v33 }
 0xa4a   :  { %v91_v41 = vadd.f32 %v90_v37, %v89_v29  ;;  %v97_v42 = vrot.slane %v96_v38, 2 }
 0xa4b   :  { %v839_v21 = vpop.eup %838 }
 0xa4c   :  { %v698_v24 = vmul.f32 0.5, %v839_v21  ;;  %v92_v43 = vrot.slane %v91_v41, 1  ;;  %v98_v44 = vadd.f32 %v97_v42, %v96_v38 }
 0xa4d   :  { %v841_v36 = vpop.eup %840 }
 0xa4e   :  { %v700_v35 = vadd.f32 0.5, %v698_v24  ;;  %v93_v45 = vadd.f32 %v92_v43, %v91_v41  ;;  %v99_v46 = vrot.slane %v98_v44, 1  ;;  %v699_v50 = vmul.f32 0.5, %v841_v36 }
 0xa50   :  { %v706_v39 = vmul.f32 %v841_v36, %v700_v35  ;;  %v705_v40 = vmul.f32 %v703_v30, %v700_v35  ;;  %v100_v17 = vadd.f32 %v99_v46, %v98_v44  ;;  %v701_v52 = vadd.f32 0.5, %v699_v50 }
 0xa52   :  { %708 = vrot.lane.b32.xlu1 %v706_v39, %s894_s0  ;;  %v101_v47 = vadd.f32 %v100_v17, %v93_v45 }
 0xa54   :  { %102 = vadd.xlane.f32.xlu0 %v101_v47 }
 0xac4   :  { %v709_v48 = vpop.permute.xlu1 %708 }
 0xac5   :  { %v711_v49 = vadd.f32 %v709_v48, %v705_v40 }
 0xac7   :  { %842 = vtanh.f32 %v711_v49 }
 0xad4   :  { %v843_v54 = vpop.eup %842 }
 0xad5   :  { %v713_v55 = vmul.f32 %v843_v54, %v701_v52 }
 0xad7   :  { %v720_v56 = vmul.f32 %v718_v53, %v713_v55 }
 0xad9   :  { %v722_v57 = vsel %vm721_vm9, %v720_v56, 0.0 }
 0xada   :  { %723 = vadd.xlane.f32.xlu1 %v722_v57 }
 0xadd   :  { %v103_v59 = vpop.xlane.xlu0 %102 }
 0xb63   :  { %v724_v61 = vpop.xlane.xlu1 %723 }
 0xb64   :  { %v725_v62 = vadd.f32 %v724_v61, %v103_v59 }
 0xb66   :  { %v732_v63 = vadd.f32 %v730_v60, %v725_v62 }
 0xb68   :  { %v733_v1 = vmul.f32 0.5, %v732_v63 }
 0xb6a   :  { %844 = vtanh.f32 %v733_v1 }
 0xb77   :  { %v845_v2 = vpop.eup %844 }
 0xb78   :  { %v735_v5 = vadd.f32 1.0, %v845_v2 }
 0xb7a   :  { %v736_v6 = vmul.f32 0.5, %v735_v5 }
 0xb7c   :  { %738 = vst.msk [vmem:[#allocation5 - $0x7] sm:$0x80] %vm737_vm10, %v736_v6 }
 0xb7d   :  { %877 = shalt.err (!%p874_p9)
}
 0xb7e   :  { %748 = dma.vmem_to_hbm [thread:$0]  %s746_s11, 16, %s1083_s4, [#allocation4]  }
 0xb7f   :  { %888 = dma.done.wait [#allocation4], 16  }
 0xb80   :  { %889 = vsyncadd [#allocation4], 4294967280 }
 0xb81   :  { %752 = vsyncpa [#allocation3], 1 }
 0xb82   :  { %753 = vsyncpa [#allocation4], 1 }

</bundles_post_ra>
